<compile_context>
chip_gen: v5e
topology: v5e:2x2
jax: 0.10.0
libtpu: 0.0.40
codegen_flags: <defaults>
</compile_context>

<pallas_src>
import functools
import inspect

import jax
import jax.numpy as jnp
from jax import lax
from jax.experimental import pallas as pl
from jax.experimental.pallas import tpu as pltpu


def _hardswish(v):
    # PyTorch nn.Hardswish: v * relu6(v + 3) / 6
    return v * jnp.clip(v + 3.0, 0.0, 6.0) * (1.0 / 6.0)


def _supports_pipeline_mode():
    try:
        return ("pipeline_mode" in inspect.signature(pl.BlockSpec).parameters
                and hasattr(pl, "Buffered"))
    except Exception:
        return False


_SINGLE_BUFFER = _supports_pipeline_mode()


def _const_spec(shape):
    """Constant-index (resident-across-steps) spec; single-buffered when supported."""
    idx = lambda b: (0,) * len(shape)
    if _SINGLE_BUFFER:
        return pl.BlockSpec(shape, idx, pipeline_mode=pl.Buffered(1))
    return pl.BlockSpec(shape, idx)


def _make_kernel(identity_shortcut, compute_dtype):
    def kernel(x_ref, r_ref, rt_ref, g_ref, gt_ref, mp_ref, mn_ref,
               w1_ref, gng_ref, gnb_ref, w2_ref, *rest):
        if identity_shortcut:
            lng_ref, lnb_ref, o_ref = rest
            wsc_ref = None
        else:
            wsc_ref, lng_ref, lnb_ref, o_ref = rest

        rows = x_ref.shape[0]            # block_b * T
        H = w2_ref.shape[0] // 3

        X = x_ref[...]                                   # (rows, Cin) f32
        Xc = X.astype(compute_dtype)                     # cast ONCE; reused by conv1 + shortcut
        mprev = mp_ref[...]                              # (rows, 1) edge masks (compute_dtype)
        mnext = mn_ref[...]

        def shifted(a):
            # a_prev[r] = a[r-1] (0 at sequence start), a_next[r] = a[r+1] (0 at end).
            # pltpu.roll shifts are non-negative; wrapped rows are killed by the masks,
            # so shifted rows never leak across sequences inside a block.
            a_prev = pltpu.roll(a, shift=1, axis=0) * mprev
            a_next = pltpu.roll(a, shift=rows - 1, axis=0) * mnext
            return a_prev, a_next

        # ---- Conv1d(Cin -> H, k=3, pad=1, no bias): fused single matmul (Cin is tiny) ----
        x_prev, x_next = shifted(Xc)
        a_cat = jnp.concatenate([x_prev, Xc, x_next], axis=-1)               # (rows, 3*Cin)
        h = jnp.dot(a_cat, w1_ref[...], preferred_element_type=jnp.float32)  # (rows, H) f32

        # ---- GroupNorm(n_groups, H): factored statistics, all in f32 ----
        # r_ref  (block_b, rows): 1/T on rows of the same batch element
        # g_ref  (H, n_groups)  : 1/group_size on channels of the same group
        # rt/gt  : transposed 0/1 indicators used to broadcast stats back to (rows, H)
        row_mean = jnp.dot(r_ref[...], h, preferred_element_type=jnp.float32)        # (bb, H)
        row_msq = jnp.dot(r_ref[...], h * h, preferred_element_type=jnp.float32)     # (bb, H)
        g_mean = jnp.dot(row_mean, g_ref[...], preferred_element_type=jnp.float32)   # (bb, G)
        g_msq = jnp.dot(row_msq, g_ref[...], preferred_element_type=jnp.float32)     # (bb, G)
        g_var = jnp.maximum(g_msq - g_mean * g_mean, 0.0)    # clamp against cancellation
        g_inv = lax.rsqrt(g_var + 1e-5)                      # tiny rsqrt, broadcast afterwards
        mean_b = jnp.dot(jnp.dot(rt_ref[...], g_mean, preferred_element_type=jnp.float32),
                         gt_ref[...], preferred_element_type=jnp.float32)            # (rows, H)
        inv_b = jnp.dot(jnp.dot(rt_ref[...], g_inv, preferred_element_type=jnp.float32),
                        gt_ref[...], preferred_element_type=jnp.float32)             # (rows, H)
        hn = (h - mean_b) * inv_b
        hn = _hardswish(hn * gng_ref[...] + gnb_ref[...])

        # ---- Conv1d(H -> Cout, k=3, pad=1, no bias): 3 accumulated dots, no 3H concat ----
        hc = hn.astype(compute_dtype)
        h_prev, h_next = shifted(hc)
        y = jnp.dot(h_prev, w2_ref[0:H, :], preferred_element_type=jnp.float32)
        y = y + jnp.dot(hc, w2_ref[H:2 * H, :], preferred_element_type=jnp.float32)
        y = y + jnp.dot(h_next, w2_ref[2 * H:3 * H, :], preferred_element_type=jnp.float32)

        # ---- shortcut: Identity when Cin == Cout, else Linear (no bias) ----
        if identity_shortcut:
            y = y + X
        else:
            y = y + jnp.dot(Xc, wsc_ref[...], preferred_element_type=jnp.float32)

        # ---- LayerNorm(Cout) + Hardswish ----
        mu = jnp.mean(y, axis=-1, keepdims=True)
        d = y - mu
        var = jnp.mean(d * d, axis=-1, keepdims=True)
        yn = d * lax.rsqrt(var + 1e-5)
        yn = yn * lng_ref[...] + lnb_ref[...]
        o_ref[...] = _hardswish(yn).astype(o_ref.dtype)

    return kernel


def _tpu_flavor():
    """Return (is_v7, single_core, known_tpu) from the device kind string."""
    try:
        kind = jax.devices()[0].device_kind.lower()
    except Exception:
        kind = ""
    is_v7 = "v7" in kind
    single_core = (not is_v7) and (("lite" in kind) or ("v5e" in kind) or ("v6e" in kind))
    known_tpu = "tpu" in kind
    return is_v7, single_core, known_tpu


def _working_set_bytes(bb, T, Cin, H, Cout, n_groups, cbytes, weight_bytes):
    rows = bb * T
    f32 = 4
    io = 2 * rows * (Cin + Cout) * f32                       # double-buffered in/out blocks
    conv1 = rows * 3 * Cin * cbytes                          # shifted copies + concat operand
    acts = rows * (Cin * (f32 + cbytes)                      # X, Xc
                   + H * (3 * f32 + 3 * cbytes)              # h, mean_b/inv_b, hn/hc + rolls
                   + Cout * 2 * f32)                         # y, yn
    stats = 2 * bb * rows * f32 + 2 * H * n_groups * f32 + 4 * bb * (H + n_groups) * f32
    return int(1.4 * (io + conv1 + acts + stats)) + weight_bytes + (2 << 20)


def _pick_block_b(B, T, ws_fn, *, want_multi_step, vmem_budget, row_cap):
    divisors = [d for d in range(B, 0, -1) if B % d == 0]

    def ok(bb, need_even_steps):
        steps = B // bb
        if want_multi_step and B >= 2 and steps < 2:
            return False                 # keep both TensorCores busy (v7x / megacore)
        if need_even_steps and steps % 2 != 0:
            return False                 # avoid one TC idling on an odd tail
        if (bb * T) % 8 != 0 and bb != B:
            return False                 # sublane-aligned row blocks
        if bb * T > row_cap:
            return False
        return ws_fn(bb) <= vmem_budget

    passes = (True, False) if want_multi_step else (False,)
    for need_even in passes:
        for bb in divisors:
            if ok(bb, need_even):
                return bb
    return B                             # single full block (block == full array is always legal)


def residual_basic_block(x, params, n_groups, *, compute_dtype=jnp.bfloat16,
                         block_b=None, out_dtype=jnp.float32):
    """x: (B, T, input_dims) channel-last. params from init_params."""
    w1, gn_g, gn_b, w2, wsc, ln_g, ln_b = params
    B, T, Cin = x.shape
    H = w1.shape[2]
    Cout = w2.shape[2]
    assert H % n_groups == 0, "hidden_dims must be divisible by n_groups"
    gs = H // n_groups
    identity_shortcut = wsc is None
    assert identity_shortcut == (Cin == Cout)

    cbytes = jnp.dtype(compute_dtype).itemsize
    weight_bytes = ((3 * Cin * H + 3 * H * Cout
                     + (0 if identity_shortcut else Cin * Cout)) * cbytes
                    + 2 * (H + Cout) * 4)

    is_v7, single_core, known_tpu = _tpu_flavor()
    vmem_cap = (48 if (is_v7 or not known_tpu) else 100) * 1024 * 1024
    row_cap = 1024 if is_v7 else 2048
    ws_fn = lambda bb: _working_set_bytes(bb, T, Cin, H, Cout, n_groups, cbytes, weight_bytes)

    if block_b is None:
        block_b = _pick_block_b(B, T, ws_fn,
                                want_multi_step=not single_core,
                                vmem_budget=int(0.85 * vmem_cap),
                                row_cap=row_cap)
    assert B % block_b == 0
    BBT = block_b * T
    assert BBT % 8 == 0 or block_b == B, "rows per block must be a multiple of 8"
    vmem_limit = int(min(vmem_cap, max(32 * 1024 * 1024, int(1.25 * ws_fn(block_b)))))

    # Host-side (free) prep: flatten batch+time into rows, fuse conv1's 3 taps into one
    # (3*Cin, H) weight, cast matmul weights to compute_dtype, and build the tiny constant
    # GroupNorm indicator matrices + conv edge masks ONCE (resident in VMEM across steps).
    x2 = x.reshape(B * T, Cin)
    w1f = w1.reshape(3 * Cin, H).astype(compute_dtype)
    w2f = w2.reshape(3 * H, Cout).astype(compute_dtype)

    b_of_row = jnp.arange(BBT, dtype=jnp.int32) // T
    g_of_ch = jnp.arange(H, dtype=jnp.int32) // gs
    R = (jnp.arange(block_b, dtype=jnp.int32)[:, None] == b_of_row[None, :]
         ).astype(jnp.float32) * (1.0 / T)                                # (block_b, BBT)
    RT = (b_of_row[:, None] == jnp.arange(block_b, dtype=jnp.int32)[None, :]
          ).astype(jnp.float32)                                           # (BBT, block_b)
    G = (g_of_ch[:, None] == jnp.arange(n_groups, dtype=jnp.int32)[None, :]
         ).astype(jnp.float32) * (1.0 / gs)                               # (H, n_groups)
    GT = (jnp.arange(n_groups, dtype=jnp.int32)[:, None] == g_of_ch[None, :]
          ).astype(jnp.float32)                                           # (n_groups, H)
    t_of_row = jnp.arange(BBT, dtype=jnp.int32) % T
    m_prev = (t_of_row != 0).astype(compute_dtype)[:, None]               # (BBT, 1)
    m_next = (t_of_row != T - 1).astype(compute_dtype)[:, None]           # (BBT, 1)

    operands = [x2, R, RT, G, GT, m_prev, m_next, w1f, gn_g, gn_b, w2f]
    in_specs = [
        pl.BlockSpec((BBT, Cin), lambda b: (b, 0)),
        _const_spec((block_b, BBT)),
        _const_spec((BBT, block_b)),
        _const_spec((H, n_groups)),
        _const_spec((n_groups, H)),
        _const_spec((BBT, 1)),
        _const_spec((BBT, 1)),
        _const_spec((3 * Cin, H)),
        _const_spec((1, H)),
        _const_spec((1, H)),
        _const_spec((3 * H, Cout)),
    ]
    if not identity_shortcut:
        operands.append(wsc.astype(compute_dtype))
        in_specs.append(_const_spec((Cin, Cout)))
    operands += [ln_g, ln_b]
    in_specs += [_const_spec((1, Cout)), _const_spec((1, Cout))]

    flops = 2 * B * T * (3 * Cin * H + 3 * H * Cout
                         + (0 if identity_shortcut else Cin * Cout)
                         + 2 * H * (block_b + n_groups))
    bytes_accessed = (x2.size * 4 + B * T * Cout * jnp.dtype(out_dtype).itemsize
                      + weight_bytes)
    cost = pl.CostEstimate(flops=int(flops),
                           transcendentals=int(2 * B * T + B * n_groups),
                           bytes_accessed=int(bytes_accessed))

    kernel = _make_kernel(identity_shortcut, compute_dtype)
    out2 = pl.pallas_call(
        kernel,
        out_shape=jax.ShapeDtypeStruct((B * T, Cout), out_dtype),
        grid=(B // block_b,),
        in_specs=in_specs,
        out_specs=pl.BlockSpec((BBT, Cout), lambda b: (b, 0)),
        compiler_params=pltpu.CompilerParams(
            dimension_semantics=("parallel",),
            vmem_limit_bytes=vmem_limit,
        ),
        cost_estimate=cost,
    )(*operands)
    return out2.reshape(B, T, Cout)


def init_params(key, input_dims, output_dims, n_groups=16, hidden_dims=None):
    hidden = hidden_dims if hidden_dims is not None else max(
        n_groups * (output_dims // n_groups), n_groups)
    assert hidden % n_groups == 0
    k1, k2, k3, k4, k5, k6, k7 = jax.random.split(key, 7)
    # PyTorch Conv1d weight is (Cout, Cin, K); stored here pre-transposed as (K, Cin, Cout).
    w1 = 0.2 * jax.random.normal(k1, (3, input_dims, hidden), jnp.float32)
    w2 = 0.2 * jax.random.normal(k2, (3, hidden, output_dims), jnp.float32)
    if input_dims != output_dims:
        wsc = 0.2 * jax.random.normal(k3, (input_dims, output_dims), jnp.float32)  # Linear W.T
    else:
        wsc = None                                   # nn.Identity shortcut
    gn_g = 1.0 + 0.1 * jax.random.normal(k4, (1, hidden), jnp.float32)
    gn_b = 0.1 * jax.random.normal(k5, (1, hidden), jnp.float32)
    ln_g = 1.0 + 0.1 * jax.random.normal(k6, (1, output_dims), jnp.float32)
    ln_b = 0.1 * jax.random.normal(k7, (1, output_dims), jnp.float32)
    return (w1, gn_g, gn_b, w2, wsc, ln_g, ln_b), hidden


def _reference(x, params, n_groups):
    """Pure-JAX f32 reference mirroring the PyTorch module."""
    w1, gn_g, gn_b, w2, wsc, ln_g, ln_b = params
    B, T, _ = x.shape
    H = w1.shape[2]

    def conv(xc, w):
        xp = jnp.pad(xc, ((0, 0), (1, 1), (0, 0)))
        return sum(jnp.einsum('btc,cd->btd', xp[:, k:k + T], w[k]) for k in range(3))

    h = conv(x, w1)
    gs = H // n_groups
    h4 = h.reshape(B, T, n_groups, gs)
    mean = h4.mean(axis=(1, 3), keepdims=True)
    var = ((h4 - mean) ** 2).mean(axis=(1, 3), keepdims=True)
    hn = ((h4 - mean) / jnp.sqrt(var + 1e-5)).reshape(B, T, H)
    hn = _hardswish(hn * gn_g.reshape(H) + gn_b.reshape(H))
    y = conv(hn, w2)
    y = y + (x if wsc is None else jnp.einsum('btc,cd->btd', x, wsc))
    mu = y.mean(axis=-1, keepdims=True)
    v = ((y - mu) ** 2).mean(axis=-1, keepdims=True)
    yn = (y - mu) / jnp.sqrt(v + 1e-5)
    return _hardswish(yn * ln_g.reshape(-1) + ln_b.reshape(-1))


if __name__ == "__main__":
    B, T = 2, 16
    n_groups = 16
    key = jax.random.PRNGKey(0)
    kx, kp, kx2, kp2 = jax.random.split(key, 4)

    # --- case 1: input_dims != output_dims (Linear shortcut) ---
    input_dims, output_dims = 4, 32
    x = jax.random.normal(kx, (B, T, input_dims), jnp.float32)
    params, hidden = init_params(kp, input_dims, output_dims, n_groups)
    ref = _reference(x, params, n_groups)

    run_f32 = jax.jit(functools.partial(residual_basic_block, n_groups=n_groups,
                                        compute_dtype=jnp.float32))
    out32 = jax.block_until_ready(run_f32(x, params))
    assert out32.shape == (B, T, output_dims)
    assert float(jnp.max(jnp.abs(out32 - ref))) < 2e-3

    run_bf16 = jax.jit(functools.partial(residual_basic_block, n_groups=n_groups,
                                         compute_dtype=jnp.bfloat16))
    out16 = jax.block_until_ready(run_bf16(x, params))
    # loose tolerance: matmul operands are bf16 (f32 accumulation)
    assert bool(jnp.all(jnp.isfinite(out16)))
    assert float(jnp.max(jnp.abs(out16 - ref))) < 2e-1

    # --- case 2: input_dims == output_dims (Identity shortcut, no wsc matmul) ---
    input_dims2 = output_dims2 = 32
    x2 = jax.random.normal(kx2, (B, T, input_dims2), jnp.float32)
    params2, _ = init_params(kp2, input_dims2, output_dims2, n_groups)
    ref2 = _reference(x2, params2, n_groups)
    out2 = jax.block_until_ready(run_f32(x2, params2))
    assert float(jnp.max(jnp.abs(out2 - ref2))) < 2e-3

    print("KERNEL_OK")
</pallas_src>

<mosaic_0001>
module attributes {stable_mosaic.version = 11 : i64} {
  func.func @kernel(%arg0: i32, %arg1: memref<16x4xf32, #tpu.memory_space<vmem>>, %arg2: memref<1x16xf32, #tpu.memory_space<vmem>>, %arg3: memref<16x1xf32, #tpu.memory_space<vmem>>, %arg4: memref<32x16xf32, #tpu.memory_space<vmem>>, %arg5: memref<16x32xf32, #tpu.memory_space<vmem>>, %arg6: memref<16x1xf32, #tpu.memory_space<vmem>>, %arg7: memref<16x1xf32, #tpu.memory_space<vmem>>, %arg8: memref<12x32xf32, #tpu.memory_space<vmem>>, %arg9: memref<1x32xf32, #tpu.memory_space<vmem>>, %arg10: memref<1x32xf32, #tpu.memory_space<vmem>>, %arg11: memref<96x32xf32, #tpu.memory_space<vmem>>, %arg12: memref<4x32xf32, #tpu.memory_space<vmem>>, %arg13: memref<1x32xf32, #tpu.memory_space<vmem>>, %arg14: memref<1x32xf32, #tpu.memory_space<vmem>>, %arg15: memref<16x32xf32, #tpu.memory_space<vmem>>) attributes {dimension_semantics = [#tpu.dimension_semantics<parallel>], iteration_bounds = array<i64: 2>, scalar_prefetch = 0 : i64, scratch_operands = 0 : i64, tpu.core_type = #tpu.core_type<tc>, window_params = [{transform_indices = @transform_0, window_bounds = array<i64: 16, 4>}, {pipeline_mode = #tpu.pipeline_mode<synchronous>, transform_indices = @transform_1, window_bounds = array<i64: 1, 16>}, {pipeline_mode = #tpu.pipeline_mode<synchronous>, transform_indices = @transform_2, window_bounds = array<i64: 16, 1>}, {pipeline_mode = #tpu.pipeline_mode<synchronous>, transform_indices = @transform_3, window_bounds = array<i64: 32, 16>}, {pipeline_mode = #tpu.pipeline_mode<synchronous>, transform_indices = @transform_4, window_bounds = array<i64: 16, 32>}, {pipeline_mode = #tpu.pipeline_mode<synchronous>, transform_indices = @transform_5, window_bounds = array<i64: 16, 1>}, {pipeline_mode = #tpu.pipeline_mode<synchronous>, transform_indices = @transform_6, window_bounds = array<i64: 16, 1>}, {pipeline_mode = #tpu.pipeline_mode<synchronous>, transform_indices = @transform_7, window_bounds = array<i64: 12, 32>}, {pipeline_mode = #tpu.pipeline_mode<synchronous>, transform_indices = @transform_8, window_bounds = array<i64: 1, 32>}, {pipeline_mode = #tpu.pipeline_mode<synchronous>, transform_indices = @transform_9, window_bounds = array<i64: 1, 32>}, {pipeline_mode = #tpu.pipeline_mode<synchronous>, transform_indices = @transform_10, window_bounds = array<i64: 96, 32>}, {pipeline_mode = #tpu.pipeline_mode<synchronous>, transform_indices = @transform_11, window_bounds = array<i64: 4, 32>}, {pipeline_mode = #tpu.pipeline_mode<synchronous>, transform_indices = @transform_12, window_bounds = array<i64: 1, 32>}, {pipeline_mode = #tpu.pipeline_mode<synchronous>, transform_indices = @transform_13, window_bounds = array<i64: 1, 32>}, {transform_indices = @transform_14, window_bounds = array<i64: 16, 32>}]} {
    %c0 = arith.constant 0 : index
    %c0_0 = arith.constant 0 : index
    %0 = vector.load %arg1[%c0, %c0_0] : memref<16x4xf32, #tpu.memory_space<vmem>>, vector<16x4xf32>
    %c0_1 = arith.constant 0 : index
    %c0_2 = arith.constant 0 : index
    %1 = vector.load %arg6[%c0_1, %c0_2] : memref<16x1xf32, #tpu.memory_space<vmem>>, vector<16x1xf32>
    %c0_3 = arith.constant 0 : index
    %c0_4 = arith.constant 0 : index
    %2 = vector.load %arg7[%c0_3, %c0_4] : memref<16x1xf32, #tpu.memory_space<vmem>>, vector<16x1xf32>
    %c1_i32 = arith.constant 1 : i32
    %3 = tpu.dynamic_rotate %0 by %c1_i32 dim 0 : vector<16x4xf32>, i32 -> vector<16x4xf32>
    %4 = vector.broadcast %1 : vector<16x1xf32> to vector<16x4xf32>
    %5 = arith.mulf %3, %4 : vector<16x4xf32>
    %c15_i32 = arith.constant 15 : i32
    %6 = tpu.dynamic_rotate %0 by %c15_i32 dim 0 : vector<16x4xf32>, i32 -> vector<16x4xf32>
    %7 = vector.broadcast %2 : vector<16x1xf32> to vector<16x4xf32>
    %8 = arith.mulf %6, %7 : vector<16x4xf32>
    %9 = tpu.concatenate %5, %0, %8 in 1 : vector<16x4xf32>, vector<16x4xf32>, vector<16x4xf32> -> vector<16x12xf32>
    %c0_5 = arith.constant 0 : index
    %c0_6 = arith.constant 0 : index
    %10 = vector.load %arg8[%c0_5, %c0_6] : memref<12x32xf32, #tpu.memory_space<vmem>>, vector<12x32xf32>
    %cst = arith.constant dense<0.000000e+00> : vector<16x32xf32>
    %11 = tpu.matmul %9, %10, %cst {dimension_numbers = #tpu.dot_dimension_numbers<[1], [0], [0], [1], [0, 0, 1, 1], [], []>} : vector<16x12xf32>, vector<12x32xf32>, vector<16x32xf32> -> vector<16x32xf32>
    %c0_7 = arith.constant 0 : index
    %c0_8 = arith.constant 0 : index
    %12 = vector.load %arg2[%c0_7, %c0_8] : memref<1x16xf32, #tpu.memory_space<vmem>>, vector<1x16xf32>
    %cst_9 = arith.constant dense<0.000000e+00> : vector<1x32xf32>
    %13 = tpu.matmul %12, %11, %cst_9 {dimension_numbers = #tpu.dot_dimension_numbers<[1], [0], [0], [1], [0, 0, 1, 1], [], []>} : vector<1x16xf32>, vector<16x32xf32>, vector<1x32xf32> -> vector<1x32xf32>
    %c0_10 = arith.constant 0 : index
    %c0_11 = arith.constant 0 : index
    %14 = vector.load %arg2[%c0_10, %c0_11] : memref<1x16xf32, #tpu.memory_space<vmem>>, vector<1x16xf32>
    %15 = arith.mulf %11, %11 : vector<16x32xf32>
    %cst_12 = arith.constant dense<0.000000e+00> : vector<1x32xf32>
    %16 = tpu.matmul %14, %15, %cst_12 {dimension_numbers = #tpu.dot_dimension_numbers<[1], [0], [0], [1], [0, 0, 1, 1], [], []>} : vector<1x16xf32>, vector<16x32xf32>, vector<1x32xf32> -> vector<1x32xf32>
    %c0_13 = arith.constant 0 : index
    %c0_14 = arith.constant 0 : index
    %17 = vector.load %arg4[%c0_13, %c0_14] : memref<32x16xf32, #tpu.memory_space<vmem>>, vector<32x16xf32>
    %cst_15 = arith.constant dense<0.000000e+00> : vector<1x16xf32>
    %18 = tpu.matmul %13, %17, %cst_15 {dimension_numbers = #tpu.dot_dimension_numbers<[1], [0], [0], [1], [0, 0, 1, 1], [], []>} : vector<1x32xf32>, vector<32x16xf32>, vector<1x16xf32> -> vector<1x16xf32>
    %c0_16 = arith.constant 0 : index
    %c0_17 = arith.constant 0 : index
    %19 = vector.load %arg4[%c0_16, %c0_17] : memref<32x16xf32, #tpu.memory_space<vmem>>, vector<32x16xf32>
    %cst_18 = arith.constant dense<0.000000e+00> : vector<1x16xf32>
    %20 = tpu.matmul %16, %19, %cst_18 {dimension_numbers = #tpu.dot_dimension_numbers<[1], [0], [0], [1], [0, 0, 1, 1], [], []>} : vector<1x32xf32>, vector<32x16xf32>, vector<1x16xf32> -> vector<1x16xf32>
    %21 = arith.mulf %18, %18 : vector<1x16xf32>
    %22 = arith.subf %20, %21 : vector<1x16xf32>
    %cst_19 = arith.constant 0.000000e+00 : f32
    %23 = vector.broadcast %cst_19 : f32 to vector<1x16xf32>
    %24 = arith.maximumf %22, %23 : vector<1x16xf32>
    %cst_20 = arith.constant 9.99999974E-6 : f32
    %25 = vector.broadcast %cst_20 : f32 to vector<1x16xf32>
    %26 = arith.addf %24, %25 : vector<1x16xf32>
    %27 = math.rsqrt %26 : vector<1x16xf32>
    %c0_21 = arith.constant 0 : index
    %c0_22 = arith.constant 0 : index
    %28 = vector.load %arg3[%c0_21, %c0_22] : memref<16x1xf32, #tpu.memory_space<vmem>>, vector<16x1xf32>
    %cst_23 = arith.constant dense<0.000000e+00> : vector<16x16xf32>
    %29 = tpu.matmul %28, %18, %cst_23 {dimension_numbers = #tpu.dot_dimension_numbers<[1], [0], [0], [1], [0, 0, 1, 1], [], []>} : vector<16x1xf32>, vector<1x16xf32>, vector<16x16xf32> -> vector<16x16xf32>
    %c0_24 = arith.constant 0 : index
    %c0_25 = arith.constant 0 : index
    %30 = vector.load %arg5[%c0_24, %c0_25] : memref<16x32xf32, #tpu.memory_space<vmem>>, vector<16x32xf32>
    %cst_26 = arith.constant dense<0.000000e+00> : vector<16x32xf32>
    %31 = tpu.matmul %29, %30, %cst_26 {dimension_numbers = #tpu.dot_dimension_numbers<[1], [0], [0], [1], [0, 0, 1, 1], [], []>} : vector<16x16xf32>, vector<16x32xf32>, vector<16x32xf32> -> vector<16x32xf32>
    %c0_27 = arith.constant 0 : index
    %c0_28 = arith.constant 0 : index
    %32 = vector.load %arg3[%c0_27, %c0_28] : memref<16x1xf32, #tpu.memory_space<vmem>>, vector<16x1xf32>
    %cst_29 = arith.constant dense<0.000000e+00> : vector<16x16xf32>
    %33 = tpu.matmul %32, %27, %cst_29 {dimension_numbers = #tpu.dot_dimension_numbers<[1], [0], [0], [1], [0, 0, 1, 1], [], []>} : vector<16x1xf32>, vector<1x16xf32>, vector<16x16xf32> -> vector<16x16xf32>
    %c0_30 = arith.constant 0 : index
    %c0_31 = arith.constant 0 : index
    %34 = vector.load %arg5[%c0_30, %c0_31] : memref<16x32xf32, #tpu.memory_space<vmem>>, vector<16x32xf32>
    %cst_32 = arith.constant dense<0.000000e+00> : vector<16x32xf32>
    %35 = tpu.matmul %33, %34, %cst_32 {dimension_numbers = #tpu.dot_dimension_numbers<[1], [0], [0], [1], [0, 0, 1, 1], [], []>} : vector<16x16xf32>, vector<16x32xf32>, vector<16x32xf32> -> vector<16x32xf32>
    %36 = arith.subf %11, %31 : vector<16x32xf32>
    %37 = arith.mulf %36, %35 : vector<16x32xf32>
    %c0_33 = arith.constant 0 : index
    %c0_34 = arith.constant 0 : index
    %38 = vector.load %arg9[%c0_33, %c0_34] : memref<1x32xf32, #tpu.memory_space<vmem>>, vector<1x32xf32>
    %39 = vector.broadcast %38 : vector<1x32xf32> to vector<16x32xf32>
    %40 = arith.mulf %37, %39 : vector<16x32xf32>
    %c0_35 = arith.constant 0 : index
    %c0_36 = arith.constant 0 : index
    %41 = vector.load %arg10[%c0_35, %c0_36] : memref<1x32xf32, #tpu.memory_space<vmem>>, vector<1x32xf32>
    %42 = vector.broadcast %41 : vector<1x32xf32> to vector<16x32xf32>
    %43 = arith.addf %40, %42 : vector<16x32xf32>
    %cst_37 = arith.constant 3.000000e+00 : f32
    %44 = vector.broadcast %cst_37 : f32 to vector<16x32xf32>
    %45 = arith.addf %43, %44 : vector<16x32xf32>
    %cst_38 = arith.constant 0.000000e+00 : f32
    %cst_39 = arith.constant 6.000000e+00 : f32
    %46 = vector.broadcast %cst_38 : f32 to vector<16x32xf32>
    %47 = arith.maximumf %46, %45 : vector<16x32xf32>
    %48 = vector.broadcast %cst_39 : f32 to vector<16x32xf32>
    %49 = arith.minimumf %48, %47 : vector<16x32xf32>
    %50 = arith.mulf %43, %49 : vector<16x32xf32>
    %cst_40 = arith.constant 0.166666672 : f32
    %51 = vector.broadcast %cst_40 : f32 to vector<16x32xf32>
    %52 = arith.mulf %50, %51 : vector<16x32xf32>
    %c1_i32_41 = arith.constant 1 : i32
    %53 = tpu.dynamic_rotate %52 by %c1_i32_41 dim 0 : vector<16x32xf32>, i32 -> vector<16x32xf32>
    %54 = vector.broadcast %1 : vector<16x1xf32> to vector<16x32xf32>
    %55 = arith.mulf %53, %54 : vector<16x32xf32>
    %c15_i32_42 = arith.constant 15 : i32
    %56 = tpu.dynamic_rotate %52 by %c15_i32_42 dim 0 : vector<16x32xf32>, i32 -> vector<16x32xf32>
    %57 = vector.broadcast %2 : vector<16x1xf32> to vector<16x32xf32>
    %58 = arith.mulf %56, %57 : vector<16x32xf32>
    %c0_43 = arith.constant 0 : index
    %c0_44 = arith.constant 0 : index
    %59 = vector.load %arg11[%c0_43, %c0_44] : memref<96x32xf32, #tpu.memory_space<vmem>>, vector<32x32xf32>
    %cst_45 = arith.constant dense<0.000000e+00> : vector<16x32xf32>
    %60 = tpu.matmul %55, %59, %cst_45 {dimension_numbers = #tpu.dot_dimension_numbers<[1], [0], [0], [1], [0, 0, 1, 1], [], []>} : vector<16x32xf32>, vector<32x32xf32>, vector<16x32xf32> -> vector<16x32xf32>
    %c32 = arith.constant 32 : index
    %c0_46 = arith.constant 0 : index
    %61 = vector.load %arg11[%c32, %c0_46] : memref<96x32xf32, #tpu.memory_space<vmem>>, vector<32x32xf32>
    %cst_47 = arith.constant dense<0.000000e+00> : vector<16x32xf32>
    %62 = tpu.matmul %52, %61, %cst_47 {dimension_numbers = #tpu.dot_dimension_numbers<[1], [0], [0], [1], [0, 0, 1, 1], [], []>} : vector<16x32xf32>, vector<32x32xf32>, vector<16x32xf32> -> vector<16x32xf32>
    %63 = arith.addf %60, %62 : vector<16x32xf32>
    %c64 = arith.constant 64 : index
    %c0_48 = arith.constant 0 : index
    %64 = vector.load %arg11[%c64, %c0_48] : memref<96x32xf32, #tpu.memory_space<vmem>>, vector<32x32xf32>
    %cst_49 = arith.constant dense<0.000000e+00> : vector<16x32xf32>
    %65 = tpu.matmul %58, %64, %cst_49 {dimension_numbers = #tpu.dot_dimension_numbers<[1], [0], [0], [1], [0, 0, 1, 1], [], []>} : vector<16x32xf32>, vector<32x32xf32>, vector<16x32xf32> -> vector<16x32xf32>
    %66 = arith.addf %63, %65 : vector<16x32xf32>
    %c0_50 = arith.constant 0 : index
    %c0_51 = arith.constant 0 : index
    %67 = vector.load %arg12[%c0_50, %c0_51] : memref<4x32xf32, #tpu.memory_space<vmem>>, vector<4x32xf32>
    %cst_52 = arith.constant dense<0.000000e+00> : vector<16x32xf32>
    %68 = tpu.matmul %0, %67, %cst_52 {dimension_numbers = #tpu.dot_dimension_numbers<[1], [0], [0], [1], [0, 0, 1, 1], [], []>} : vector<16x4xf32>, vector<4x32xf32>, vector<16x32xf32> -> vector<16x32xf32>
    %69 = arith.addf %66, %68 : vector<16x32xf32>
    %cst_53 = arith.constant dense<0.000000e+00> : vector<16xf32>
    %70 = vector.multi_reduction <add>, %69, %cst_53 [1] : vector<16x32xf32> to vector<16xf32>
    %71 = vector.shape_cast %70 : vector<16xf32> to vector<16x1xf32>
    %cst_54 = arith.constant 3.200000e+01 : f32
    %72 = vector.broadcast %cst_54 : f32 to vector<16x1xf32>
    %73 = arith.divf %71, %72 : vector<16x1xf32>
    %74 = vector.broadcast %73 : vector<16x1xf32> to vector<16x32xf32>
    %75 = arith.subf %69, %74 : vector<16x32xf32>
    %76 = arith.mulf %75, %75 : vector<16x32xf32>
    %cst_55 = arith.constant dense<0.000000e+00> : vector<16xf32>
    %77 = vector.multi_reduction <add>, %76, %cst_55 [1] : vector<16x32xf32> to vector<16xf32>
    %78 = vector.shape_cast %77 : vector<16xf32> to vector<16x1xf32>
    %cst_56 = arith.constant 3.200000e+01 : f32
    %79 = vector.broadcast %cst_56 : f32 to vector<16x1xf32>
    %80 = arith.divf %78, %79 : vector<16x1xf32>
    %cst_57 = arith.constant 9.99999974E-6 : f32
    %81 = vector.broadcast %cst_57 : f32 to vector<16x1xf32>
    %82 = arith.addf %80, %81 : vector<16x1xf32>
    %83 = math.rsqrt %82 : vector<16x1xf32>
    %84 = vector.broadcast %83 : vector<16x1xf32> to vector<16x32xf32>
    %85 = arith.mulf %75, %84 : vector<16x32xf32>
    %c0_58 = arith.constant 0 : index
    %c0_59 = arith.constant 0 : index
    %86 = vector.load %arg13[%c0_58, %c0_59] : memref<1x32xf32, #tpu.memory_space<vmem>>, vector<1x32xf32>
    %87 = vector.broadcast %86 : vector<1x32xf32> to vector<16x32xf32>
    %88 = arith.mulf %85, %87 : vector<16x32xf32>
    %c0_60 = arith.constant 0 : index
    %c0_61 = arith.constant 0 : index
    %89 = vector.load %arg14[%c0_60, %c0_61] : memref<1x32xf32, #tpu.memory_space<vmem>>, vector<1x32xf32>
    %90 = vector.broadcast %89 : vector<1x32xf32> to vector<16x32xf32>
    %91 = arith.addf %88, %90 : vector<16x32xf32>
    %cst_62 = arith.constant 3.000000e+00 : f32
    %92 = vector.broadcast %cst_62 : f32 to vector<16x32xf32>
    %93 = arith.addf %91, %92 : vector<16x32xf32>
    %cst_63 = arith.constant 0.000000e+00 : f32
    %cst_64 = arith.constant 6.000000e+00 : f32
    %94 = vector.broadcast %cst_63 : f32 to vector<16x32xf32>
    %95 = arith.maximumf %94, %93 : vector<16x32xf32>
    %96 = vector.broadcast %cst_64 : f32 to vector<16x32xf32>
    %97 = arith.minimumf %96, %95 : vector<16x32xf32>
    %98 = arith.mulf %91, %97 : vector<16x32xf32>
    %cst_65 = arith.constant 0.166666672 : f32
    %99 = vector.broadcast %cst_65 : f32 to vector<16x32xf32>
    %100 = arith.mulf %98, %99 : vector<16x32xf32>
    %c0_66 = arith.constant 0 : index
    %c0_67 = arith.constant 0 : index
    %101 = vector.load %arg15[%c0_66, %c0_67] : memref<16x32xf32, #tpu.memory_space<vmem>>, vector<16x32xf32>
    tpu.vector_store %arg15[%c0_66, %c0_67], %100 {strides = array<i32>} : memref<16x32xf32, #tpu.memory_space<vmem>>, vector<16x32xf32>,
    return
  }
  func.func @transform_0(%arg0: i32) -> (i32, i32) {
    %c0_i32 = arith.constant 0 : i32
    %c0_i32_0 = arith.constant 0 : i32
    return %arg0, %c0_i32 : i32, i32
  }
  func.func @transform_1(%arg0: i32) -> (i32, i32) {
    %c0_i32 = arith.constant 0 : i32
    %c0_i32_0 = arith.constant 0 : i32
    %c0_i32_1 = arith.constant 0 : i32
    return %c0_i32, %c0_i32_0 : i32, i32
  }
  func.func @transform_2(%arg0: i32) -> (i32, i32) {
    %c0_i32 = arith.constant 0 : i32
    %c0_i32_0 = arith.constant 0 : i32
    %c0_i32_1 = arith.constant 0 : i32
    return %c0_i32, %c0_i32_0 : i32, i32
  }
  func.func @transform_3(%arg0: i32) -> (i32, i32) {
    %c0_i32 = arith.constant 0 : i32
    %c0_i32_0 = arith.constant 0 : i32
    %c0_i32_1 = arith.constant 0 : i32
    return %c0_i32, %c0_i32_0 : i32, i32
  }
  func.func @transform_4(%arg0: i32) -> (i32, i32) {
    %c0_i32 = arith.constant 0 : i32
    %c0_i32_0 = arith.constant 0 : i32
    %c0_i32_1 = arith.constant 0 : i32
    return %c0_i32, %c0_i32_0 : i32, i32
  }
  func.func @transform_5(%arg0: i32) -> (i32, i32) {
    %c0_i32 = arith.constant 0 : i32
    %c0_i32_0 = arith.constant 0 : i32
    %c0_i32_1 = arith.constant 0 : i32
    return %c0_i32, %c0_i32_0 : i32, i32
  }
  func.func @transform_6(%arg0: i32) -> (i32, i32) {
    %c0_i32 = arith.constant 0 : i32
    %c0_i32_0 = arith.constant 0 : i32
    %c0_i32_1 = arith.constant 0 : i32
    return %c0_i32, %c0_i32_0 : i32, i32
  }
  func.func @transform_7(%arg0: i32) -> (i32, i32) {
    %c0_i32 = arith.constant 0 : i32
    %c0_i32_0 = arith.constant 0 : i32
    %c0_i32_1 = arith.constant 0 : i32
    return %c0_i32, %c0_i32_0 : i32, i32
  }
  func.func @transform_8(%arg0: i32) -> (i32, i32) {
    %c0_i32 = arith.constant 0 : i32
    %c0_i32_0 = arith.constant 0 : i32
    %c0_i32_1 = arith.constant 0 : i32
    return %c0_i32, %c0_i32_0 : i32, i32
  }
  func.func @transform_9(%arg0: i32) -> (i32, i32) {
    %c0_i32 = arith.constant 0 : i32
    %c0_i32_0 = arith.constant 0 : i32
    %c0_i32_1 = arith.constant 0 : i32
    return %c0_i32, %c0_i32_0 : i32, i32
  }
  func.func @transform_10(%arg0: i32) -> (i32, i32) {
    %c0_i32 = arith.constant 0 : i32
    %c0_i32_0 = arith.constant 0 : i32
    %c0_i32_1 = arith.constant 0 : i32
    return %c0_i32, %c0_i32_0 : i32, i32
  }
  func.func @transform_11(%arg0: i32) -> (i32, i32) {
    %c0_i32 = arith.constant 0 : i32
    %c0_i32_0 = arith.constant 0 : i32
    %c0_i32_1 = arith.constant 0 : i32
    return %c0_i32, %c0_i32_0 : i32, i32
  }
  func.func @transform_12(%arg0: i32) -> (i32, i32) {
    %c0_i32 = arith.constant 0 : i32
    %c0_i32_0 = arith.constant 0 : i32
    %c0_i32_1 = arith.constant 0 : i32
    return %c0_i32, %c0_i32_0 : i32, i32
  }
  func.func @transform_13(%arg0: i32) -> (i32, i32) {
    %c0_i32 = arith.constant 0 : i32
    %c0_i32_0 = arith.constant 0 : i32
    %c0_i32_1 = arith.constant 0 : i32
    return %c0_i32, %c0_i32_0 : i32, i32
  }
  func.func @transform_14(%arg0: i32) -> (i32, i32) {
    %c0_i32 = arith.constant 0 : i32
    %c0_i32_0 = arith.constant 0 : i32
    return %arg0, %c0_i32 : i32, i32
  }
}

</mosaic_0001>

<bundles_post_ra>
// kernel: residual_basic_block.1
= control target key start
LH: loop header
LB: loop body
LE: loop exit
PB: predicated region body
PF: predicated region fallthrough
CT: control target
= control target key end

     0   :  { %s1645_s0 = inlined_call_operand.vmem [shape: f32[32,4], index: 0, kind: input, shape index: {}]   ;;  %s1646_s1 = inlined_call_operand.vmem [shape: f32[1,16], index: 1, kind: input, shape index: {}]   ;;  %s1647_s2 = inlined_call_operand.vmem [shape: f32[16,1], index: 2, kind: input, shape index: {}]   ;;  %s1648_s3 = inlined_call_operand.vmem [shape: f32[32,16], index: 3, kind: input, shape index: {}]   ;;  %s1649_s4 = inlined_call_operand.vmem [shape: f32[16,32], index: 4, kind: input, shape index: {}]   ;;  %s1650_s5 = inlined_call_operand.vmem [shape: f32[16,1], index: 5, kind: input, shape index: {}]   ;;  %s1651_s6 = inlined_call_operand.vmem [shape: f32[16,1], index: 6, kind: input, shape index: {}]   ;;  %s1652_s7 = inlined_call_operand.vmem [shape: f32[12,32], index: 7, kind: input, shape index: {}]   ;;  %s1653_s8 = inlined_call_operand.vmem [shape: f32[1,32], index: 8, kind: input, shape index: {}]   ;;  %s1654_s9 = inlined_call_operand.vmem [shape: f32[1,32], index: 9, kind: input, shape index: {}]   ;;  %s1655_s10 = inlined_call_operand.vmem [shape: f32[96,32], index: 10, kind: input, shape index: {}]   ;;  %s1656_s11 = inlined_call_operand.vmem [shape: f32[4,32], index: 11, kind: input, shape index: {}]   ;;  %s1657_s12 = inlined_call_operand.vmem [shape: f32[1,32], index: 12, kind: input, shape index: {}]   ;;  %s1658_s13 = inlined_call_operand.vmem [shape: f32[1,32], index: 13, kind: input, shape index: {}]   ;;  %s1659_s14 = inlined_call_operand.hbm [shape: f32[32,32], index: 14, kind: output, shape index: {}]  }
   0x1   :  { %1662 = sst [smem:[#allocation7_spill]] %s1645_s0 }
   0x2   :  { %1663 = sst [smem:[#allocation8_spill]] %s1646_s1 }
   0x3   :  { %19 = vsyncpa [#allocation3], 0 }
   0x4   :  { %21 = vsyncpa [#allocation3 + $0x1], 0  ;;  %s1370_s29 = smov 0   ;;  %s1372_s30 = smov 0  }
   0x5   :  { %s1374_s15 = smov 0   ;;  %s1376_s16 = smov 0  }
   0x6 LB: > { %1664 = sst [smem:[#allocation5_spill]] %s1284_s15  ;;  %s1391_s17 = sadd.s32 4294967295, %s1288_s16   ;;  %s1288_s16 = sphi %s1376_s16, %s1675_s16   ;;  %s1284_s15 = sphi %s1374_s15, %s1672_s15   ;;  %s1280_s30 = sphi %s1372_s30, %s1674_s30   ;;  %s1276_s29 = sphi %s1370_s29, %s1673_s29  }
   0x7   : > { %s1128_s18 = sadd.s32 4294967294, %s1288_s16   ;;  %s1395_s19 = sadd.s32 1, %s1288_s16  }
   0x8   : > { %s333_s20 = sadd.s32 1, %s1284_s15  ;;  %s330_s21 = ssub.s32 %s1288_s16, %s1395_s19 }
   0x9   : > { %p343_p0 = scmp.ne.s32.totalorder %s1284_s15, %s1280_s30  ;;  %p331_p1 = scmp.eq.s32.totalorder %s330_s21, 0 }
   0xa   : > { %p344_p2 = scmp.eq.s32.totalorder %s1391_s17, 1  ;;  %p349_p3 = scmp.ne.s32.totalorder %s1280_s30, %s1276_s29 }
   0xb   : > { %p350_p4 = scmp.eq.s32.totalorder %s1128_s18, 1  ;;  %p1131_p7 = scmp.ge.s32.totalorder %s1288_s16, 1 }
   0xc   : > { %s1406_s22 = scalar_select %p331_p1, %s1284_s15, %s333_s20  }
   0xd   : > { %p1408_p5 = por %p344_p2, %p343_p0  ;;  %p1412_p6 = por %p350_p4, %p349_p3 }
   0xe   : > { %1665 = sst [smem:[#allocation6_spill]] %s1406_s22  ;;  %p416_p8 = scmp.lt.s32.totalorder %s1288_s16, 3 }
  0x10   : > { %p417_p9 = pnand %p1131_p7, %p416_p8 }
  0x11   : > { %s1133_s18 = sshll.u32 (!%p417_p9), %s1391_s17, 1  ;;  %s1668_s0 = sld [smem:[#allocation7_spill]] (!%p417_p9) }
  0x12   : > { %420 = sbr.rel (%p417_p9) target bundleno = 1389 (0x56d), region = 76  ;;  %p463_p10 = scmp.lt.s32.totalorder (!%p417_p9), %s1133_s18, 3 }
  0x13   : > { %s1291_s27 = smov (!%p417_p9), 4   ;;  %s1661_s15 = smov (!%p417_p9), 8  }
  0x14   : > { %s1669_s1 = sld [smem:[#allocation8_spill]] (!%p417_p9)  ;;  %s459_s21 = sand.u32 (!%p417_p9), 1, %s1280_s30  }
  0x15   : > { %s1166_s26 = sshll.u32 (!%p417_p9), %s1391_s17, 4  ;;  %s1051_s17 = scalar_lea.sflag (!%p417_p9), [#allocation3], %s459_s21 }
  0x16   : > { %s1062_s28 = scalar_lea.hbm (!%p417_p9), %s1659_s14, %s1166_s26  ;;  %s1246_s26 = scalar_lea.hbm (!%p417_p9), %s1659_s14, 32 }
  0x17   : > { %v473_v0 = vld [vmem:[%s1651_s6] sm:$0xff]  ;;  %v1290_v2 = vmov 0   ;;  %s1677_s18 = smov (!%p463_p10, %s1133_s18), 3  ;;  %v474_v3 = vld [vmem:[%s1651_s6 + $0x8] sm:$0xff]  ;;  %vm542_vm0 = vcmask 1043456   ;;  %v477_v7 = vlaneseq  ;;  %vm527_vm3 = vcmask 31744  }
  0x18   : > { %v471_v1 = vld [vmem:[%s1650_s5] sm:$0xff]  ;;  %1211 = vset.pattern.permute.xlu0 %v1290_v2  ;;  %1212 = vset.pattern.permute.xlu1 %v1290_v2  ;;  %s1134_s20 = sshll.u32 %s1677_s18, 3  ;;  %v534_v6 = vld [vmem:[%s1652_s7 + $0x8] sm:$0xf]  ;;  %vm530_vm4 = vcmask 64512   ;;  %vm535_vm5 = vcmask 97280  }
  0x19   : > { %501 = vperm.xlu0 %1211, %v473_v0   ;;  %484 = vperm.xlu1 %1212, %v471_v1   ;;  %s466_s25 = scalar_lea.vmem %s1668_s0, %s1134_s20  ;;  %v1441_v8 = vshrl.u32 %v477_v7, 7  ;;  %v472_v16 = vld [vmem:[%s1650_s5 + $0x8] sm:$0xff]  ;;  %v533_v18 = vld [vmem:[%s1652_s7] sm:$0xff]  ;;  %v619_v35 = vld [vmem:[%s1648_s3 + $0x18] sm:$0xff]  ;;  %vm570_vm6 = vcmask 130048   ;;  %vm620_vm7 = vcmask 261120  }
  0x1a   : > { %1213 = vset.pattern.permute.xlu2 %v1290_v2  ;;  %v1431_v4 = vld [vmem:[%s466_s25] sm:$0xff]  ;;  %v1434_v5 = vld [vmem:[%s466_s25 + $0x8] sm:$0xff]  ;;  %1135 = vmatpush.msk.msra.mxu0 %vm542_vm0, %v534_v6  ;;  %v618_v36 = vld [vmem:[%s1648_s3 + $0x10] sm:$0xff]  ;;  %vm690_vm8 = vcmask 1040384   ;;  %vm683_vm9 = vcmask 7168   ;;  %s1132_s25 = sshll.u32 %s459_s21, 4 }
  0x1b   : > { %v494_v9 = vrot.slane %v1431_v4, 1  ;;  %v495_v10 = vrot.slane %v1434_v5, 1  ;;  %vm496_vm1 = vcmp.lt.s32.totalorder %v1441_v8, 7  ;;  %v475_v20 = vrot.slane %v1431_v4, 7  ;;  %636 = vmatpush.msra.mxu3 %v619_v35  ;;  %v617_v37 = vld [vmem:[%s1648_s3 + $0x8] sm:$0xff]  ;;  %v616_v43 = vld [vmem:[%s1648_s3] sm:$0xff] }
  0x1c   : > { %561 = vmatpush.msra.mxu0 %v533_v18  ;;  %v476_v21 = vrot.slane %v1434_v5, 7  ;;  %vm479_vm2 = vcmp.lt.s32.totalorder %v1441_v8, 1  ;;  %v569_v41 = vld [vmem:[%s1669_s1] sm:$0x1]  ;;  %v718_v51 = vld [vmem:[%s1649_s4 + $0x8] sm:$0xff]  ;;  %v847_v6 = vld [vmem:[%s1655_s10 + $0x30] sm:$0xff] }
  0x1d   : > { %v497_v11 = vsel %vm496_vm1, %v494_v9, %v495_v10  ;;  %v498_v14 = vsel %vm496_vm1, %v495_v10, %v494_v9  ;;  %637 = vmatpush.msra.mxu3 %v618_v36  ;;  %v681_v46 = vld [vmem:[%s1647_s2] sm:$0xff]  ;;  %v682_v54 = vld [vmem:[%s1647_s2 + $0x8] sm:$0xff]  ;;  %v844_v10 = vld [vmem:[%s1655_s10 + $0x18] sm:$0xff]  ;;  %s1065_s22 = sshll.u32 %s1062_s28, 4  ;;  %s1066_s22 = int_to_ptr.hbm [resolvable:$true] %s1065_s22 }
  0x1e   : > { %v481_v22 = vsel %vm479_vm2, %v476_v21, %v475_v20  ;;  %v480_v29 = vsel %vm479_vm2, %v475_v20, %v476_v21  ;;  %v717_v62 = vld [vmem:[%s1649_s4] sm:$0xff]  ;;  %v846_v7 = vld [vmem:[%s1655_s10 + $0x28] sm:$0xff]  ;;  %s1240_s20 = sshra.s32 %s1066_s22, 4  ;;  %s1241_s20 = int_to_ptr.hbm [resolvable:$true] %s1240_s20 }
  0x1f   : > { %638 = vmatpush.msra.mxu3 %v617_v37  ;;  %v845_v9 = vld [vmem:[%s1655_s10 + $0x20] sm:$0xff]  ;;  %p1247_p0 = scmp.lt.s32.totalorder %s1241_s20, %s1659_s14 }
  0x20   : > { %v841_v20 = vld [vmem:[%s1655_s10] sm:$0xff] }
  0x21   : > { %506 = vperm.xlu0 %1211, %v474_v3   ;;  %513 = vrot.lane.b32.xlu1 %v1431_v4, %s1291_s27  ;;  %v848_v3 = vld [vmem:[%s1655_s10 + $0x38] sm:$0xff]  ;;  %v907_v21 = vld [vmem:[%s1655_s10 + $0x40] sm:$0xff] }
  0x22   : > { %639 = vmatpush.msra.mxu3 %v616_v43 }
  0x24   : > { %739 = vmatpush.msrb.mxu3 %v718_v51 }
  0x26   : > { %740 = vmatpush.msrb.mxu3 %v717_v62 }
  0x29   : > { %515 = vrot.lane.b32.xlu0 %v1434_v5, %s1291_s27  ;;  %s461_s27 = scalar_lea.vmem [#allocation2], %s1132_s25  ;;  %s1242_s25 = scalar_lea.hbm %s1241_s20, 16 }
  0x2a   : > { %s1063_s18 = sshll.u32 %s461_s27, 4  ;;  %p1243_p11 = scmp.ne.s32.totalorder %s1241_s20, %s1242_s25  ;;  %s1064_s18 = int_to_ptr.vmem [resolvable:$true] %s1063_s18 }
  0x2b   : > { %p1248_p1 = scmp.lt.s32.totalorder %s1246_s26, %s1242_s25 }
  0x2c   : > { %p1244_p12 = pnand %p1243_p11, %p1408_p5 }
  0x2d   : > { %p1249_p2 = por %p1248_p1, %p1247_p0 }
  0x2e   : > { %p1245_p13 = pneg %p1244_p12 }
  0x30   : > { %p1250_p3 = pnand %p1249_p2, %p1245_p13 }
  0x8b   : > { %v1448_v12 = vpop.permute.xlu0 %501  ;;  %v1464_v19 = vpop.permute.xlu1 %484 }
  0x8c   : > { %v509_v13 = vmul.f32 %v1448_v12, %v497_v11  ;;  %v492_v23 = vmul.f32 %v1464_v19, %v481_v22  ;;  %v910_v11 = vld [vmem:[%s1655_s10 + $0x58] sm:$0xff] }
  0x8e   : > { %521 = vrot.lane.b32.xlu2 %v509_v13, %s1661_s15  ;;  %v843_v13 = vld [vmem:[%s1655_s10 + $0x10] sm:$0xff] }
  0x93   : > { %v1454_v15 = vpop.permute.xlu0 %506  ;;  %v514_v24 = vpop.permute.xlu1 %513 }
  0x94   : > { %v510_v17 = vmul.f32 %v1454_v15, %v498_v14  ;;  %v528_v25 = vsel %vm527_vm3, %v492_v23, %v514_v24  ;;  %v909_v14 = vld [vmem:[%s1655_s10 + $0x50] sm:$0xff]  ;;  %v1214_v23 = vld [vmem:[%s1653_s8] ss:$0 sm:$0xff] }
  0x96   : > { %523 = vrot.lane.b32.xlu1 %v510_v17, %s1661_s15  ;;  %489 = vperm.xlu2 %1213, %v472_v16   ;;  %v842_v16 = vld [vmem:[%s1655_s10 + $0x8] sm:$0xff] }
  0x97   : > { %v908_v17 = vld [vmem:[%s1655_s10 + $0x48] sm:$0xff] }
  0x9b   : > { %v516_v31 = vpop.permute.xlu0 %515 }
  0xe8   : > { %v522_v26 = vpop.permute.xlu2 %521 }
  0xe9   : > { %v531_v27 = vsel %vm530_vm4, %v528_v25, %v522_v26  ;;  %v1215_v26 = vld [vmem:[%s1654_s9] ss:$0 sm:$0xff] }
  0xea   : > { %1136 = vmatmul.msk.f32.vlgmr.msra.gmra.mxu0 %vm535_vm5, %v531_v27 }
  0xf0   : > { %v1473_v28 = vpop.permute.xlu2 %489 }
  0xf1   : > { %v493_v30 = vmul.f32 %v1473_v28, %v480_v29 }
  0xf3   : > { %v529_v32 = vsel %vm527_vm3, %v493_v30, %v516_v31  ;;  %v942_v31 = vld [vmem:[%s1656_s11] sm:$0xf] }
 0x108   : > { %v524_v33 = vpop.permute.xlu1 %523 }
 0x109   : > { %v532_v34 = vsel %vm530_vm4, %v529_v32, %v524_v33 }
 0x10a   : > { %1137 = vmatmul.msk.f32.gmra.mxu0 %vm535_vm5, %v532_v34 }
 0x167   : > { %v1488_v38 = vpop.f32.mrf.mxu0 }
 0x168   : > { %v594_v42 = vmul.f32 %v1488_v38, %v1488_v38 }
 0x187   : > { %v1490_v39 = vpop.f32.mrf.mxu0 }
 0x188   : > { %588 = vmatpush.msra.mxu1 %v1490_v39  ;;  %v595_v40 = vmul.f32 %v1490_v39, %v1490_v39 }
 0x18a   : > { %589 = vmatpush.msra.mxu1 %v1488_v38  ;;  %610 = vmatpush.msra.mxu2 %v595_v40 }
 0x18b   : > { %1138 = vmatmul.msk.f32.vlgmr.msra.gmra.mxu1 %vm570_vm6, %v569_v41 }
 0x18c   : > { %611 = vmatpush.msra.mxu2 %v594_v42  ;;  %659 = vmatpush.msrb.mxu1 %v619_v35 }
 0x18d   : > { %1139 = vmatmul.msk.f32.vlgmr.msra.gmra.mxu2 %vm570_vm6, %v569_v41 }
 0x18e   : > { %660 = vmatpush.msrb.mxu1 %v618_v36 }
 0x190   : > { %661 = vmatpush.msrb.mxu1 %v617_v37 }
 0x192   : > { %662 = vmatpush.msrb.mxu1 %v616_v43 }
 0x194   : > { %794 = vmatpush.msra.mxu1 %v718_v51 }
 0x196   : > { %795 = vmatpush.msra.mxu1 %v717_v62 }
 0x208   : > { %v591_v44 = vpop.f32.mrf.mxu1 }
 0x209   : > { %1140 = vmatmul.msk.f32.vlgmr.msra.gmra.mxu3 %vm620_vm7, %v591_v44 }
 0x20a   : > { %896 = vmatpush.msra.mxu3 %v844_v10 }
 0x20c   : > { %897 = vmatpush.msra.mxu3 %v843_v13 }
 0x20e   : > { %898 = vmatpush.msra.mxu3 %v842_v16 }
 0x210   : > { %v613_v45 = vpop.f32.mrf.mxu2  ;;  %899 = vmatpush.msra.mxu3 %v841_v20 }
 0x211   : > { %1141 = vmatmul.msk.f32.vlgmr.msrb.gmra.mxu1 %vm620_vm7, %v613_v45 }
 0x212   : > { %1158 = vmatpush.msk.msrb.mxu1 %vm542_vm0, %v942_v31 }
 0x28c   : > { %v641_v47 = vpop.f32.mrf.mxu3 }
 0x28d   : > { %v667_v48 = vmul.f32 %v641_v47, %v641_v47  ;;  %1142 = vmatpush.msk.msrb.mxu2 %vm690_vm8, %v641_v47 }
 0x28e   : > { %v664_v49 = vpop.f32.mrf.mxu1  ;;  %1143 = vmatmul.msk.f32.vlgmr.msrb.gmra.mxu2 %vm683_vm9, %v681_v46 }
 0x28f   : > { %v668_v50 = vsub.f32 %v664_v49, %v667_v48  ;;  %867 = vmatpush.msra.mxu2 %v848_v3 }
 0x291   : > { %v669_v52 = vmax.f32 %v668_v50, 0.0  ;;  %868 = vmatpush.msra.mxu2 %v847_v6  ;;  %v1293_v6 = vmov 32.0  }
 0x293   : > { %v670_v53 = vadd.f32 1e-05, %v669_v52  ;;  %869 = vmatpush.msra.mxu2 %v846_v7 }
 0x295   : > { %1218 = vrsqrt.f32 %v670_v53  ;;  %vm677_vm11 = vweird.f32 %v670_v53  ;;  %870 = vmatpush.msra.mxu2 %v845_v9 }
 0x296   : > { %1144 = vmatmul.msk.f32.gmra.mxu2 %vm683_vm9, %v682_v54  ;;  %1220 = vrcp.f32 %v1293_v6 }
 0x29b   : > { %v1219_v55 = vpop.eup %1218 }
 0x29c   : > { %v672_v56 = vmul.f32 %v1219_v55, %v670_v53  ;;  %vm678_vm10 = vweird.f32 %v1219_v55  ;;  %v1221_v7 = vpop.eup %1220 }
 0x29d   : > { %vm679_vm12 = vmor %vm677_vm11, %vm678_vm10  ;;  %v982_v9 = vmul.f32 32.0, %v1221_v7  ;;  %vm986_vm13 = vweird.f32 %v1221_v7 }
 0x29e   : > { %v673_v57 = vmul.f32 %v1219_v55, %v672_v56 }
 0x29f   : > { %v983_v10 = vsub.f32 1.0, %v982_v9 }
 0x2a0   : > { %v674_v58 = vmul.f32 0.5, %v673_v57 }
 0x2a2   : > { %v675_v59 = vsub.f32 1.5, %v674_v58 }
 0x2a4   : > { %v676_v60 = vmul.f32 %v1219_v55, %v675_v59 }
 0x2a6   : > { %v680_v61 = vsel %vm679_vm12, %v1219_v55, %v676_v60 }
 0x2a7   : > { %1147 = vmatpush.msk.msrb.mxu0 %vm690_vm8, %v680_v61 }
 0x2a8   : > { %1148 = vmatmul.msk.f32.vlgmr.msrb.gmra.mxu0 %vm683_vm9, %v681_v46 }
 0x2a9   : > { %929 = vmatpush.msra.mxu0 %v910_v11  ;;  %v984_v11 = vmul.f32 %v1221_v7, %v983_v10 }
 0x2ab   : > { %930 = vmatpush.msra.mxu0 %v909_v14  ;;  %v985_v13 = vadd.f32 %v1221_v7, %v984_v11 }
 0x2ad   : > { %931 = vmatpush.msra.mxu0 %v908_v17  ;;  %v987_v14 = vsel %vm986_vm13, %v1221_v7, %v985_v13 }
 0x2af   : > { %932 = vmatpush.msra.mxu0 %v907_v21 }
 0x2b0   : > { %1149 = vmatmul.msk.f32.gmra.mxu0 %vm683_vm9, %v682_v54 }
 0x311   : > { %v711_v63 = vpop.f32.mrf.mxu2 }
 0x312   : > { %1145 = vmatmul.msk.f32.vlgmr.msrb.gmra.mxu3 %vm570_vm6, %v711_v63 }
 0x319   : > { %v714_v0 = vpop.f32.mrf.mxu2 }
 0x31a   : > { %1146 = vmatmul.msk.f32.gmra.mxu3 %vm570_vm6, %v714_v0 }
 0x325   : > { %v768_v1 = vpop.f32.mrf.mxu0 }
 0x326   : > { %1150 = vmatmul.msk.f32.vlgmr.msra.gmra.mxu1 %vm570_vm6, %v768_v1 }
 0x32d   : > { %v771_v2 = vpop.f32.mrf.mxu0 }
 0x32e   : > { %1151 = vmatmul.msk.f32.gmra.mxu1 %vm570_vm6, %v771_v2 }
 0x336   : > { %1159 = vmatmul.msk.f32.vlgmr.msrb.gmra.mxu1 %vm527_vm3, %v1431_v4 }
 0x33e   : > { %1160 = vmatmul.msk.f32.gmra.mxu1 %vm527_vm3, %v1434_v5 }
 0x395   : > { %v742_v18 = vpop.f32.mrf.mxu3 }
 0x396   : > { %v803_v22 = vsub.f32 %v1488_v38, %v742_v18 }
 0x39d   : > { %v745_v29 = vpop.f32.mrf.mxu3 }
 0x39e   : > { %v804_v32 = vsub.f32 %v1490_v39, %v745_v29 }
 0x3a3   : > { %v797_v24 = vpop.f32.mrf.mxu1 }
 0x3a4   : > { %v805_v25 = vmul.f32 %v803_v22, %v797_v24 }
 0x3a6   : > { %v811_v27 = vmul.f32 %v1214_v23, %v805_v25 }
 0x3a8   : > { %v817_v30 = vadd.f32 %v1215_v26, %v811_v27 }
 0x3aa   : > { %v819_v33 = vadd.f32 3.0, %v817_v30 }
 0x3ab   : > { %v800_v34 = vpop.f32.mrf.mxu1 }
 0x3ac   : > { %v821_v35 = vmax.f32 %v819_v33, 0.0  ;;  %v806_v36 = vmul.f32 %v804_v32, %v800_v34 }
 0x3ae   : > { %v823_v37 = vmin.f32 %v821_v35, 6.0  ;;  %v812_v38 = vmul.f32 %v1214_v23, %v806_v36 }
 0x3b0   : > { %v825_v40 = vmul.f32 %v823_v37, %v817_v30  ;;  %v818_v41 = vadd.f32 %v1215_v26, %v812_v38 }
 0x3b2   : > { %v827_v42 = vmul.f32 0.16666667, %v825_v40  ;;  %v820_v43 = vadd.f32 3.0, %v818_v41 }
 0x3b4   : > { %1152 = vmatmul.msk.f32.vlgmr.msra.gmra.mxu2 %vm620_vm7, %v827_v42  ;;  %v822_v39 = vmax.f32 %v820_v43, 0.0  ;;  %v829_v47 = vrot.slane %v827_v42, 7  ;;  %v835_v48 = vrot.slane %v827_v42, 1  ;;  %v1216_v43 = vld [vmem:[%s1657_s12] ss:$0 sm:$0xff] }
 0x3b6   : > { %v824_v44 = vmin.f32 %v822_v39, 6.0 }
 0x3b8   : > { %v826_v45 = vmul.f32 %v824_v44, %v818_v41 }
 0x3ba   : > { %v828_v46 = vmul.f32 0.16666667, %v826_v45  ;;  %v1217_v45 = vld [vmem:[%s1658_s13] ss:$0 sm:$0xff] }
 0x3bc   : > { %v830_v4 = vrot.slane %v828_v46, 7  ;;  %v836_v49 = vrot.slane %v828_v46, 1  ;;  %1153 = vmatmul.msk.f32.gmra.mxu2 %vm620_vm7, %v828_v46 }
 0x3be   : > { %v832_v50 = vsel %vm479_vm2, %v830_v4, %v829_v47  ;;  %v837_v51 = vsel %vm496_vm1, %v835_v48, %v836_v49  ;;  %v831_v53 = vsel %vm479_vm2, %v829_v47, %v830_v4  ;;  %v838_v54 = vsel %vm496_vm1, %v836_v49, %v835_v48 }
 0x3bf   : > { %v833_v5 = vmul.f32 %v832_v50, %v1464_v19  ;;  %v839_v52 = vmul.f32 %v837_v51, %v1448_v12  ;;  %v834_v55 = vmul.f32 %v831_v53, %v1473_v28  ;;  %v840_v56 = vmul.f32 %v838_v54, %v1454_v15  ;;  %v967_v12 = vpop.f32.mrf.mxu1 }
 0x3c1   : > { %1154 = vmatmul.msk.f32.vlgmr.msra.gmra.mxu3 %vm620_vm7, %v833_v5  ;;  %1156 = vmatmul.msk.f32.vlgmr.msra.gmra.mxu0 %vm620_vm7, %v839_v52 }
 0x3c7   : > { %v970_v1 = vpop.f32.mrf.mxu1 }
 0x3c9   : > { %1155 = vmatmul.msk.f32.gmra.mxu3 %vm620_vm7, %v834_v55  ;;  %1157 = vmatmul.msk.f32.gmra.mxu0 %vm620_vm7, %v840_v56 }
 0x437   : > { %v872_v19 = vpop.f32.mrf.mxu2 }
 0x43e   : > { %v934_v57 = vpop.f32.mrf.mxu0 }
 0x43f   : > { %v875_v63 = vpop.f32.mrf.mxu2 }
 0x444   : > { %v901_v58 = vpop.f32.mrf.mxu3 }
 0x445   : > { %v902_v59 = vadd.f32 %v901_v58, %v872_v19 }
 0x446   : > { %v937_v28 = vpop.f32.mrf.mxu0 }
 0x447   : > { %v940_v60 = vadd.f32 %v934_v57, %v902_v59 }
 0x449   : > { %v973_v61 = vadd.f32 %v967_v12, %v940_v60 }
 0x44b   : > { %v975_v62 = vsel %vm620_vm7, %v973_v61, 0.0 }
 0x44c   : > { %976 = vadd.xlane.f32.xlu2 %v975_v62  ;;  %v904_v8 = vpop.f32.mrf.mxu3 }
 0x44d   : > { %v905_v0 = vadd.f32 %v904_v8, %v875_v63 }
 0x44f   : > { %v941_v15 = vadd.f32 %v937_v28, %v905_v0 }
 0x451   : > { %v974_v2 = vadd.f32 %v970_v1, %v941_v15 }
 0x453   : > { %v978_v3 = vsel %vm620_vm7, %v974_v2, 0.0 }
 0x454   : > { %979 = vadd.xlane.f32.xlu0 %v978_v3 }
 0x4bf   : > { %v977_v16 = vpop.xlane.xlu2 %976 }
 0x4c0   : > { %v988_v17 = vmul.f32 %v987_v14, %v977_v16 }
 0x4c2   : > { %v990_v18 = vsub.f32 %v973_v61, %v988_v17 }
 0x4c4   : > { %v992_v20 = vmul.f32 %v990_v18, %v990_v18 }
 0x4c6   : > { %v994_v21 = vsel %vm620_vm7, %v992_v20, 0.0 }
 0x4c7   : > { %995 = vadd.xlane.f32.xlu1 %v994_v21  ;;  %v980_v22 = vpop.xlane.xlu0 %979 }
 0x4c8   : > { %v989_v23 = vmul.f32 %v987_v14, %v980_v22 }
 0x4ca   : > { %v991_v24 = vsub.f32 %v974_v2, %v989_v23 }
 0x4cc   : > { %v993_v25 = vmul.f32 %v991_v24, %v991_v24 }
 0x4ce   : > { %v997_v26 = vsel %vm620_vm7, %v993_v25, 0.0 }
 0x4cf   : > { %998 = vadd.xlane.f32.xlu2 %v997_v26 }
 0x53a   : > { %v996_v27 = vpop.xlane.xlu1 %995 }
 0x53b   : > { %v1000_v29 = vmul.f32 %v996_v27, %v987_v14 }
 0x53d   : > { %v1002_v30 = vadd.f32 1e-05, %v1000_v29 }
 0x53f   : > { %1222 = vrsqrt.f32 %v1002_v30  ;;  %vm1010_vm15 = vweird.f32 %v1002_v30 }
 0x542   : > { %v999_v31 = vpop.xlane.xlu2 %998 }
 0x543   : > { %v1001_v32 = vmul.f32 %v999_v31, %v987_v14 }
 0x545   : > { %v1223_v33 = vpop.eup %1222  ;;  %v1003_v34 = vadd.f32 1e-05, %v1001_v32 }
 0x546   : > { %v1005_v35 = vmul.f32 %v1223_v33, %v1002_v30  ;;  %vm1011_vm14 = vweird.f32 %v1223_v33 }
 0x547   : > { %1224 = vrsqrt.f32 %v1003_v34  ;;  %vm1012_vm0 = vmor %vm1010_vm15, %vm1011_vm14  ;;  %vm1020_vm2 = vweird.f32 %v1003_v34 }
 0x548   : > { %v1006_v36 = vmul.f32 %v1223_v33, %v1005_v35 }
 0x54a   : > { %v1007_v37 = vmul.f32 0.5, %v1006_v36 }
 0x54c   : > { %v1008_v38 = vsub.f32 1.5, %v1007_v37 }
 0x54d   : > { %v1225_v40 = vpop.eup %1224 }
 0x54e   : > { %v1009_v41 = vmul.f32 %v1223_v33, %v1008_v38  ;;  %v1015_v42 = vmul.f32 %v1225_v40, %v1003_v34  ;;  %vm1021_vm1 = vweird.f32 %v1225_v40 }
 0x54f   : > { %vm1022_vm3 = vmor %vm1020_vm2, %vm1021_vm1 }
 0x550   : > { %v1013_v39 = vsel %vm1012_vm0, %v1223_v33, %v1009_v41  ;;  %v1016_v44 = vmul.f32 %v1225_v40, %v1015_v42 }
 0x551   : > { %v1024_v46 = vmul.f32 %v1013_v39, %v990_v18 }
 0x552   : > { %v1017_v47 = vmul.f32 0.5, %v1016_v44 }
 0x553   : > { %v1030_v48 = vmul.f32 %v1216_v43, %v1024_v46 }
 0x554   : > { %v1018_v4 = vsub.f32 1.5, %v1017_v47 }
 0x555   : > { %v1036_v49 = vadd.f32 %v1217_v45, %v1030_v48 }
 0x556   : > { %v1019_v50 = vmul.f32 %v1225_v40, %v1018_v4 }
 0x557   : > { %v1038_v51 = vadd.f32 3.0, %v1036_v49 }
 0x558   : > { %v1023_v5 = vsel %vm1022_vm3, %v1225_v40, %v1019_v50 }
 0x559   : > { %v1040_v52 = vmax.f32 %v1038_v51, 0.0  ;;  %v1025_v53 = vmul.f32 %v1023_v5, %v991_v24 }
 0x55b   : > { %v1042_v54 = vmin.f32 %v1040_v52, 6.0  ;;  %v1031_v55 = vmul.f32 %v1216_v43, %v1025_v53 }
 0x55d   : > { %v1044_v56 = vmul.f32 %v1042_v54, %v1036_v49  ;;  %v1037_v19 = vadd.f32 %v1217_v45, %v1031_v55 }
 0x55f   : > { %v1039_v12 = vadd.f32 3.0, %v1037_v19  ;;  %v1046_v57 = vmul.f32 0.16666667, %v1044_v56 }
 0x561   : > { %v1041_v58 = vmax.f32 %v1039_v12, 0.0  ;;  %1048 = vst.msk [vmem:[%s461_s27] sm:$0xff] %vm620_vm7, %v1046_v57 }
 0x563   : > { %v1043_v59 = vmin.f32 %v1041_v58, 6.0 }
 0x565   : > { %v1045_v60 = vmul.f32 %v1043_v59, %v1037_v19 }
 0x567   : > { %v1047_v61 = vmul.f32 0.16666667, %v1045_v60 }
 0x569   : > { %1049 = vst.msk [vmem:[%s461_s27 + $0x8] sm:$0xff] %vm620_vm7, %v1047_v61 }
 0x56a   : > { %1253 = shalt.err (!%p1250_p3)
}
 0x56b   : > { %s1294_s21 = smov 128   ;;  %s1670_s27 = smov 8  }
 0x56c   : > { %1167 = dma.vmem_to_hbm [thread:$0]  (%p1408_p5), %s1064_s18, 256, %s1066_s22, %s1051_s17, %s1294_s21, %s1294_s21, %s1670_s27  }
 0x56d PF: > { %p1173_p4 = scmp.ge.s32.totalorder %s1288_s16, 2  ;;  %s1080_s1 = sand.u32 1, %s1276_s29  }
 0x56e   : > { %s1081_s0 = scalar_lea.sflag [#allocation3], %s1080_s1 }
 0x56f   : > { %p1170_p7 = pnand %p1173_p4, %p1412_p6 }
 0x571   : > { %p1171_p8 = pneg %p1170_p7 }
 0x573   : > { %1271 = dma.done.wait (%p1171_p8), %s1081_s0, 256  }
 0x574   : > { %1273 = vsyncadd (%p1171_p8), %s1081_s0, 4294967040  ;;  %s1671_s20 = sld [smem:[#allocation5_spill]]  ;;  %p24_p9 = scmp.ge.s32.totalorder %s1395_s19, 4  }
 0x575   : > { %s1672_s15 = sld [smem:[#allocation6_spill]]  ;;  %s1673_s29 = smov %s1280_s30 }
 0x576   : > { %s1675_s16 = smov %s1395_s19  ;;  %26 = sbr.rel (!%p24_p9) target bundleno = 6 (0x6), region = 111 }
 0x57a   : > { %s1674_s30 = smov %s1671_s20 }
 0x57b   :  { %1087 = vsyncpa [#allocation3], 1 }
 0x57c   :  { %1089 = vsyncpa [#allocation3 + $0x1], 1 }

</bundles_post_ra>
